<compile_context>
chip_gen: v6e
topology: v6e:2x2x1
jax: 0.10.0
libtpu: 0.0.40
codegen_flags: <defaults>
</compile_context>

<pallas_src>
import jax
import jax.numpy as jnp
from jax import lax
from jax.experimental import pallas as pl
from jax.experimental.pallas import tpu as pltpu


def _round_up(n, m):
    return ((n + m - 1) // m) * m


def _pad2(a, rows, cols):
    return jnp.pad(a, ((0, rows - a.shape[0]), (0, cols - a.shape[1])))


def _largest_divisor_leq(n, cap):
    for k in range(min(n, cap), 0, -1):
        if n % k == 0:
            return k
    return 1


def _rnn_kernel(xw_ref, xl_ref, h0_ref, q_ref, wk_ref, wth_ref, wtx_ref,
                bu_ref, bt_ref, o_ref, u_ref):
    """Single-invocation kernel; everything is VMEM resident.

    xw_ref : (n_chunks*Bp, Kw)   wide prefix input: row block c holds
                                 [x[ck] | x[ck+1] | ... | x[ck+k-1]] (compute dtype)
    xl_ref : (Bp, Ip)            x[S-1] (compute dtype)
    h0_ref : (Bp, Hp)  f32       initial hidden
    q_ref  : (Kw, Hp)            stacked  W_xh @ W_hh^{k-1-j}  (compute dtype)
    wk_ref : (Hp, Hp)            W_hh^k                         (compute dtype)
    wth_ref: (Hp, Hp+Op)         fused [W_hh | W_ho]            (compute dtype)
    wtx_ref: (Ip, Hp+Op)         fused [W_xh | W_xo]            (compute dtype)
    bu_ref : (1, Hp)   f32       b_ih @ (I + W_hh + ... + W_hh^{k-1})
    bt_ref : (1, Hp+Op) f32      [b_ih | b_io]
    o_ref  : (Bp, Hp+Op) f32     fused result: [:, :Hp]=hidden, [:, Hp:]=output
    u_ref  : (n_chunks*Bp, Hp) f32  scratch: per-chunk input contribution
    """
    Bp, _ = h0_ref.shape
    n_chunks = u_ref.shape[0] // Bp
    cdt = wk_ref.dtype

    # (1) Hoisted, chunk-batched input contribution: ONE MXU-friendly matmul
    #     covering every chunk of the prefix (bias for the whole chunk folded in).
    u_ref[...] = (
        jnp.dot(xw_ref[...], q_ref[...], preferred_element_type=jnp.float32)
        + bu_ref[...]
    )

    # (2) h-independent part of the last step, issued BEFORE the serial loop so
    #     it drains under the recurrence:  x_last @ [W_xh | W_xo] + [b_ih | b_io]
    tail_x = (
        jnp.dot(xl_ref[...], wtx_ref[...], preferred_element_type=jnp.float32)
        + bt_ref[...]
    )

    # (3) Serial recurrence over CHUNKS (k timesteps per MXU pass):
    #         h <- u[c] + h @ W_hh^k        (f32 carry, one cast per chunk)
    def chunk(c, h):
        row = pl.multiple_of(c * Bp, Bp)
        return u_ref[pl.ds(row, Bp), :] + jnp.dot(
            h.astype(cdt), wk_ref[...], preferred_element_type=jnp.float32)

    h = lax.fori_loop(0, n_chunks, chunk, h0_ref[...],
                      unroll=min(8, n_chunks))

    # (4) Single dependent tail matmul: h_{S-1} @ [W_hh | W_ho], fused store of
    #     (hidden, output) as one lane-dense (Bp, Hp+Op) slab.
    o_ref[...] = tail_x + jnp.dot(h.astype(cdt), wth_ref[...],
                                  preferred_element_type=jnp.float32)


def rnn_forward(x, h0, w_i2o, b_i2o, w_i2h, b_i2h, *,
                compute_dtype=jnp.bfloat16, max_chunk=8):
    """Pallas TPU implementation of RNN.forward.

    x     : (S, B, I)  float32
    h0    : (B, H)     float32
    w_i2o : (O, I+H)   PyTorch nn.Linear weight layout
    b_i2o : (O,)
    w_i2h : (H, I+H)
    b_i2h : (H,)
    returns (output (B, O), hidden (B, H)), both float32.
    """
    S, B, I = x.shape
    H = h0.shape[1]
    O = w_i2o.shape[0]

    # Lane/sublane-dense padded sizes.
    Bp = _round_up(max(B, 8), 8)
    Ip = _round_up(I, 128)
    Hp = _round_up(H, 128)
    Op = _round_up(O, 128)

    # Split the concatenated-feature Linears (identical math to cat + Linear):
    #   i2h(cat(x, h)) == x @ Wih_x + h @ Wih_h + bih     (same for i2o)
    wih_x = jnp.transpose(w_i2h[:, :I]).astype(jnp.float32)    # (I, H)
    wih_h = jnp.transpose(w_i2h[:, I:]).astype(jnp.float32)    # (H, H)
    wio_x = jnp.transpose(w_i2o[:, :I]).astype(jnp.float32)    # (I, O)
    wio_h = jnp.transpose(w_i2o[:, I:]).astype(jnp.float32)    # (H, O)

    # ---- Prefix (first S-1 steps) as chunks of k steps each -----------------
    P = S - 1
    if P > 0:
        k = _largest_divisor_leq(P, max_chunk)
        n_chunks = P // k
        # Powers of W_hh, computed in f32 (cast to compute dtype only at the end
        # to avoid amplifying bf16 error through matrix powers).
        powers = [jnp.eye(H, dtype=jnp.float32)]
        for _ in range(k):
            powers.append(powers[-1] @ wih_h)
        # Q rows [j*I:(j+1)*I] = W_xh @ W_hh^{k-1-j}
        q = jnp.concatenate([wih_x @ powers[k - 1 - j] for j in range(k)], axis=0)
        b_u = b_i2h.astype(jnp.float32) @ sum(powers[:k])      # b_ih @ sum_p W^p
        w_k = powers[k]
        # Wide prefix layout: row block c = [x[ck] | ... | x[ck+k-1]], padded
        # batch rows zero; built in the compute dtype (half the pad bytes).
        xw = x[:P].astype(compute_dtype).reshape(n_chunks, k, B, I)
        xw = jnp.transpose(xw, (0, 2, 1, 3))                    # (n_chunks,B,k,I)
        xw = jnp.pad(xw, ((0, 0), (0, Bp - B), (0, 0), (0, 0)))
        xw = xw.reshape(n_chunks * Bp, k * I)
    else:
        # S == 1: no recurrence before the only step; emit one no-op chunk.
        k, n_chunks = 1, 1
        q = jnp.zeros((I, H), jnp.float32)
        b_u = jnp.zeros((H,), jnp.float32)
        w_k = jnp.eye(H, dtype=jnp.float32)
        xw = jnp.zeros((Bp, I), compute_dtype)

    Kw = _round_up(k * I, 128)
    x_wide = jnp.pad(xw, ((0, 0), (0, Kw - k * I)))             # (n_chunks*Bp, Kw)
    q_p = _pad2(q, Kw, Hp).astype(compute_dtype)                # (Kw, Hp)
    wk_p = _pad2(w_k, Hp, Hp).astype(compute_dtype)             # (Hp, Hp)
    bu_p = jnp.pad(b_u, (0, Hp - H)).reshape(1, Hp)             # (1, Hp) f32

    # ---- Fused tail weights (last step computes both hidden and output) ----
    wt_h = jnp.concatenate([_pad2(wih_h, Hp, Hp), _pad2(wio_h, Hp, Op)],
                           axis=1).astype(compute_dtype)        # (Hp, Hp+Op)
    wt_x = jnp.concatenate([_pad2(wih_x, Ip, Hp), _pad2(wio_x, Ip, Op)],
                           axis=1).astype(compute_dtype)        # (Ip, Hp+Op)
    bt = jnp.concatenate([
        jnp.pad(b_i2h.astype(jnp.float32), (0, Hp - H)),
        jnp.pad(b_i2o.astype(jnp.float32), (0, Op - O)),
    ]).reshape(1, Hp + Op)                                      # (1, Hp+Op) f32

    x_last = jnp.pad(x[S - 1].astype(compute_dtype),
                     ((0, Bp - B), (0, Ip - I)))                # (Bp, Ip)
    h0_p = jnp.pad(h0.astype(jnp.float32),
                   ((0, Bp - B), (0, Hp - H)))                  # (Bp, Hp)

    grid_spec = pltpu.PrefetchScalarGridSpec(
        num_scalar_prefetch=0,
        grid=(1,),                                   # single invocation; the
        in_specs=[                                   # recurrence runs in-kernel
            pl.BlockSpec((n_chunks * Bp, Kw), lambda i: (0, 0)),   # x_wide
            pl.BlockSpec((Bp, Ip), lambda i: (0, 0)),              # x_last
            pl.BlockSpec((Bp, Hp), lambda i: (0, 0)),              # h0
            pl.BlockSpec((Kw, Hp), lambda i: (0, 0)),              # Q
            pl.BlockSpec((Hp, Hp), lambda i: (0, 0)),              # W_hh^k
            pl.BlockSpec((Hp, Hp + Op), lambda i: (0, 0)),         # [W_hh|W_ho]
            pl.BlockSpec((Ip, Hp + Op), lambda i: (0, 0)),         # [W_xh|W_xo]
            pl.BlockSpec((1, Hp), lambda i: (0, 0)),               # b_u
            pl.BlockSpec((1, Hp + Op), lambda i: (0, 0)),          # [b_ih|b_io]
        ],
        out_specs=pl.BlockSpec((Bp, Hp + Op), lambda i: (0, 0)),   # [hidden|out]
        scratch_shapes=[pltpu.VMEM((n_chunks * Bp, Hp), jnp.float32)],
    )

    fused = pl.pallas_call(
        _rnn_kernel,
        out_shape=jax.ShapeDtypeStruct((Bp, Hp + Op), jnp.float32),
        grid_spec=grid_spec,
        compiler_params=pltpu.CompilerParams(
            dimension_semantics=("arbitrary",),
            vmem_limit_bytes=64 * 1024 * 1024,       # above 16/32 MiB scoped defaults
        ),
    )(x_wide, x_last, h0_p, q_p, wk_p, wt_h, wt_x, bu_p, bt)

    hidden = fused[:B, :H]
    output = fused[:B, Hp:Hp + O]
    return output, hidden


def rnn_forward_ref(x, h0, w_i2o, b_i2o, w_i2h, b_i2h):
    """Pure-JAX reference mirroring the PyTorch loop."""
    hidden = h0
    output = None
    for step in range(x.shape[0]):
        combined = jnp.concatenate([x[step].astype(jnp.float32), hidden], axis=1)
        output = combined @ w_i2o.T + b_i2o
        hidden = combined @ w_i2h.T + b_i2h
    return output, hidden


if __name__ == "__main__":
    # Small shapes consistent with the module.
    seq_len = 8
    batch = 2
    input_size = 16
    hidden_size = 32
    output_size = 8

    key = jax.random.PRNGKey(0)
    kx, k1, k2, k3, k4 = jax.random.split(key, 5)

    x = jax.random.normal(kx, (seq_len, batch, input_size), dtype=jnp.float32)
    h0 = jnp.zeros((batch, hidden_size), dtype=jnp.float32)  # init_hidden

    # Deterministic parameter init (PyTorch nn.Linear-style uniform bound).
    fan_in = input_size + hidden_size
    bound = 1.0 / (fan_in ** 0.5)
    w_i2o = jax.random.uniform(k1, (output_size, fan_in), jnp.float32, -bound, bound)
    b_i2o = jax.random.uniform(k2, (output_size,), jnp.float32, -bound, bound)
    w_i2h = jax.random.uniform(k3, (hidden_size, fan_in), jnp.float32, -bound, bound)
    b_i2h = jax.random.uniform(k4, (hidden_size,), jnp.float32, -bound, bound)

    out_gold, hid_gold = rnn_forward_ref(x, h0, w_i2o, b_i2o, w_i2h, b_i2h)

    # f32 path: strict correctness check (chunked recurrence, k divides S-1).
    out, hidden = rnn_forward(x, h0, w_i2o, b_i2o, w_i2h, b_i2h,
                              compute_dtype=jnp.float32)
    out, hidden = jax.block_until_ready((out, hidden))
    assert out.shape == (batch, output_size)
    assert hidden.shape == (batch, hidden_size)
    assert jnp.allclose(out, out_gold, atol=1e-4, rtol=1e-4), "output mismatch (f32)"
    assert jnp.allclose(hidden, hid_gold, atol=1e-4, rtol=1e-4), "hidden mismatch (f32)"

    # Per-step fallback path (chunk size 1) must also be correct.
    out1, hid1 = rnn_forward(x, h0, w_i2o, b_i2o, w_i2h, b_i2h,
                             compute_dtype=jnp.float32, max_chunk=1)
    out1, hid1 = jax.block_until_ready((out1, hid1))
    assert jnp.allclose(out1, out_gold, atol=1e-4, rtol=1e-4), "output mismatch (k=1)"
    assert jnp.allclose(hid1, hid_gold, atol=1e-4, rtol=1e-4), "hidden mismatch (k=1)"

    # Default bf16 matmul-operand path (f32 accumulation + f32 hidden carry).
    out_bf, hid_bf = rnn_forward(x, h0, w_i2o, b_i2o, w_i2h, b_i2h)
    out_bf, hid_bf = jax.block_until_ready((out_bf, hid_bf))
    assert jnp.allclose(out_bf, out_gold, atol=1e-1, rtol=1e-1), "output mismatch (bf16)"
    assert jnp.allclose(hid_bf, hid_gold, atol=1e-1, rtol=1e-1), "hidden mismatch (bf16)"

    print("KERNEL_OK")
</pallas_src>

<mosaic_0001>
module attributes {stable_mosaic.version = 11 : i64} {
  func.func @_rnn_kernel(%arg0: i32, %arg1: memref<8x128xf32, #tpu.memory_space<vmem>>, %arg2: memref<8x128xf32, #tpu.memory_space<vmem>>, %arg3: memref<8x128xf32, #tpu.memory_space<vmem>>, %arg4: memref<128x128xf32, #tpu.memory_space<vmem>>, %arg5: memref<128x128xf32, #tpu.memory_space<vmem>>, %arg6: memref<128x256xf32, #tpu.memory_space<vmem>>, %arg7: memref<128x256xf32, #tpu.memory_space<vmem>>, %arg8: memref<1x128xf32, #tpu.memory_space<vmem>>, %arg9: memref<1x256xf32, #tpu.memory_space<vmem>>, %arg10: memref<8x256xf32, #tpu.memory_space<vmem>>, %arg11: memref<8x128xf32, #tpu.memory_space<vmem>>) attributes {dimension_semantics = [#tpu.dimension_semantics<arbitrary>], iteration_bounds = array<i64: 1>, scalar_prefetch = 0 : i64, scratch_operands = 1 : i64, tpu.core_type = #tpu.core_type<tc>, window_params = [{pipeline_mode = #tpu.pipeline_mode<synchronous>, transform_indices = @transform_0, window_bounds = array<i64: 8, 128>}, {pipeline_mode = #tpu.pipeline_mode<synchronous>, transform_indices = @transform_1, window_bounds = array<i64: 8, 128>}, {pipeline_mode = #tpu.pipeline_mode<synchronous>, transform_indices = @transform_2, window_bounds = array<i64: 8, 128>}, {pipeline_mode = #tpu.pipeline_mode<synchronous>, transform_indices = @transform_3, window_bounds = array<i64: 128, 128>}, {pipeline_mode = #tpu.pipeline_mode<synchronous>, transform_indices = @transform_4, window_bounds = array<i64: 128, 128>}, {pipeline_mode = #tpu.pipeline_mode<synchronous>, transform_indices = @transform_5, window_bounds = array<i64: 128, 256>}, {pipeline_mode = #tpu.pipeline_mode<synchronous>, transform_indices = @transform_6, window_bounds = array<i64: 128, 256>}, {pipeline_mode = #tpu.pipeline_mode<synchronous>, transform_indices = @transform_7, window_bounds = array<i64: 1, 128>}, {pipeline_mode = #tpu.pipeline_mode<synchronous>, transform_indices = @transform_8, window_bounds = array<i64: 1, 256>}, {pipeline_mode = #tpu.pipeline_mode<synchronous>, transform_indices = @transform_9, window_bounds = array<i64: 8, 256>}]} {
    %c0 = arith.constant 0 : index
    %c0_0 = arith.constant 0 : index
    %0 = vector.load %arg1[%c0, %c0_0] : memref<8x128xf32, #tpu.memory_space<vmem>>, vector<8x128xf32>
    %c0_1 = arith.constant 0 : index
    %c0_2 = arith.constant 0 : index
    %1 = vector.load %arg4[%c0_1, %c0_2] : memref<128x128xf32, #tpu.memory_space<vmem>>, vector<128x128xf32>
    %cst = arith.constant dense<0.000000e+00> : vector<8x128xf32>
    %2 = tpu.matmul %0, %1, %cst {dimension_numbers = #tpu.dot_dimension_numbers<[1], [0], [0], [1], [0, 0, 1, 1], [], []>} : vector<8x128xf32>, vector<128x128xf32>, vector<8x128xf32> -> vector<8x128xf32>
    %c0_3 = arith.constant 0 : index
    %c0_4 = arith.constant 0 : index
    %3 = vector.load %arg8[%c0_3, %c0_4] : memref<1x128xf32, #tpu.memory_space<vmem>>, vector<1x128xf32>
    %4 = vector.broadcast %3 : vector<1x128xf32> to vector<8x128xf32>
    %5 = arith.addf %2, %4 : vector<8x128xf32>
    %c0_5 = arith.constant 0 : index
    %c0_6 = arith.constant 0 : index
    %6 = vector.load %arg11[%c0_5, %c0_6] : memref<8x128xf32, #tpu.memory_space<vmem>>, vector<8x128xf32>
    tpu.vector_store %arg11[%c0_5, %c0_6], %5 {strides = array<i32>} : memref<8x128xf32, #tpu.memory_space<vmem>>, vector<8x128xf32>,
    %c0_7 = arith.constant 0 : index
    %c0_8 = arith.constant 0 : index
    %7 = vector.load %arg2[%c0_7, %c0_8] : memref<8x128xf32, #tpu.memory_space<vmem>>, vector<8x128xf32>
    %c0_9 = arith.constant 0 : index
    %c0_10 = arith.constant 0 : index
    %8 = vector.load %arg7[%c0_9, %c0_10] : memref<128x256xf32, #tpu.memory_space<vmem>>, vector<128x256xf32>
    %cst_11 = arith.constant dense<0.000000e+00> : vector<8x256xf32>
    %9 = tpu.matmul %7, %8, %cst_11 {dimension_numbers = #tpu.dot_dimension_numbers<[1], [0], [0], [1], [0, 0, 1, 1], [], []>} : vector<8x128xf32>, vector<128x256xf32>, vector<8x256xf32> -> vector<8x256xf32>
    %c0_12 = arith.constant 0 : index
    %c0_13 = arith.constant 0 : index
    %10 = vector.load %arg9[%c0_12, %c0_13] : memref<1x256xf32, #tpu.memory_space<vmem>>, vector<1x256xf32>
    %11 = vector.broadcast %10 : vector<1x256xf32> to vector<8x256xf32>
    %12 = arith.addf %9, %11 : vector<8x256xf32>
    %c0_14 = arith.constant 0 : index
    %c0_15 = arith.constant 0 : index
    %13 = vector.load %arg3[%c0_14, %c0_15] : memref<8x128xf32, #tpu.memory_space<vmem>>, vector<8x128xf32>
    %c0_i32 = arith.constant 0 : i32
    %c8_i32 = arith.constant 8 : i32
    %14 = arith.muli %c0_i32, %c8_i32 : i32
    %15 = tpu.assume_multiple %14, 8 : i32
    %16 = arith.index_cast %15 : i32 to index
    %c0_16 = arith.constant 0 : index
    %17 = vector.load %arg11[%16, %c0_16] : memref<8x128xf32, #tpu.memory_space<vmem>>, vector<8x128xf32>
    %c0_17 = arith.constant 0 : index
    %c0_18 = arith.constant 0 : index
    %18 = vector.load %arg5[%c0_17, %c0_18] : memref<128x128xf32, #tpu.memory_space<vmem>>, vector<128x128xf32>
    %cst_19 = arith.constant dense<0.000000e+00> : vector<8x128xf32>
    %19 = tpu.matmul %13, %18, %cst_19 {dimension_numbers = #tpu.dot_dimension_numbers<[1], [0], [0], [1], [0, 0, 1, 1], [], []>} : vector<8x128xf32>, vector<128x128xf32>, vector<8x128xf32> -> vector<8x128xf32>
    %20 = arith.addf %17, %19 : vector<8x128xf32>
    %c1_i32 = arith.constant 1 : i32
    %c0_20 = arith.constant 0 : index
    %c0_21 = arith.constant 0 : index
    %21 = vector.load %arg6[%c0_20, %c0_21] : memref<128x256xf32, #tpu.memory_space<vmem>>, vector<128x256xf32>
    %cst_22 = arith.constant dense<0.000000e+00> : vector<8x256xf32>
    %22 = tpu.matmul %20, %21, %cst_22 {dimension_numbers = #tpu.dot_dimension_numbers<[1], [0], [0], [1], [0, 0, 1, 1], [], []>} : vector<8x128xf32>, vector<128x256xf32>, vector<8x256xf32> -> vector<8x256xf32>
    %23 = arith.addf %12, %22 : vector<8x256xf32>
    %c0_23 = arith.constant 0 : index
    %c0_24 = arith.constant 0 : index
    %24 = vector.load %arg10[%c0_23, %c0_24] : memref<8x256xf32, #tpu.memory_space<vmem>>, vector<8x256xf32>
    tpu.vector_store %arg10[%c0_23, %c0_24], %23 {strides = array<i32>} : memref<8x256xf32, #tpu.memory_space<vmem>>, vector<8x256xf32>,
    return
  }
  func.func @transform_0(%arg0: i32) -> (i32, i32) {
    %c0_i32 = arith.constant 0 : i32
    %c0_i32_0 = arith.constant 0 : i32
    %c0_i32_1 = arith.constant 0 : i32
    return %c0_i32, %c0_i32_0 : i32, i32
  }
  func.func @transform_1(%arg0: i32) -> (i32, i32) {
    %c0_i32 = arith.constant 0 : i32
    %c0_i32_0 = arith.constant 0 : i32
    %c0_i32_1 = arith.constant 0 : i32
    return %c0_i32, %c0_i32_0 : i32, i32
  }
  func.func @transform_2(%arg0: i32) -> (i32, i32) {
    %c0_i32 = arith.constant 0 : i32
    %c0_i32_0 = arith.constant 0 : i32
    %c0_i32_1 = arith.constant 0 : i32
    return %c0_i32, %c0_i32_0 : i32, i32
  }
  func.func @transform_3(%arg0: i32) -> (i32, i32) {
    %c0_i32 = arith.constant 0 : i32
    %c0_i32_0 = arith.constant 0 : i32
    %c0_i32_1 = arith.constant 0 : i32
    return %c0_i32, %c0_i32_0 : i32, i32
  }
  func.func @transform_4(%arg0: i32) -> (i32, i32) {
    %c0_i32 = arith.constant 0 : i32
    %c0_i32_0 = arith.constant 0 : i32
    %c0_i32_1 = arith.constant 0 : i32
    return %c0_i32, %c0_i32_0 : i32, i32
  }
  func.func @transform_5(%arg0: i32) -> (i32, i32) {
    %c0_i32 = arith.constant 0 : i32
    %c0_i32_0 = arith.constant 0 : i32
    %c0_i32_1 = arith.constant 0 : i32
    return %c0_i32, %c0_i32_0 : i32, i32
  }
  func.func @transform_6(%arg0: i32) -> (i32, i32) {
    %c0_i32 = arith.constant 0 : i32
    %c0_i32_0 = arith.constant 0 : i32
    %c0_i32_1 = arith.constant 0 : i32
    return %c0_i32, %c0_i32_0 : i32, i32
  }
  func.func @transform_7(%arg0: i32) -> (i32, i32) {
    %c0_i32 = arith.constant 0 : i32
    %c0_i32_0 = arith.constant 0 : i32
    %c0_i32_1 = arith.constant 0 : i32
    return %c0_i32, %c0_i32_0 : i32, i32
  }
  func.func @transform_8(%arg0: i32) -> (i32, i32) {
    %c0_i32 = arith.constant 0 : i32
    %c0_i32_0 = arith.constant 0 : i32
    %c0_i32_1 = arith.constant 0 : i32
    return %c0_i32, %c0_i32_0 : i32, i32
  }
  func.func @transform_9(%arg0: i32) -> (i32, i32) {
    %c0_i32 = arith.constant 0 : i32
    %c0_i32_0 = arith.constant 0 : i32
    %c0_i32_1 = arith.constant 0 : i32
    return %c0_i32, %c0_i32_0 : i32, i32
  }
}

</mosaic_0001>

<bundles_post_ra>
// kernel: tpu_custom_call.1
= control target key start
LH: loop header
LB: loop body
LE: loop exit
PB: predicated region body
PF: predicated region fallthrough
CT: control target
= control target key end

     0   :  { %14 = vsyncpa [#allocation4], 0  ;;  %s980_s0 = inlined_call_operand.hbm [shape: f32[8,128], index: 0, kind: input, shape index: {}]   ;;  %s981_s1 = inlined_call_operand.hbm [shape: f32[8,128], index: 1, kind: input, shape index: {}]   ;;  %s982_s2 = inlined_call_operand.hbm [shape: f32[8,128], index: 2, kind: input, shape index: {}]   ;;  %s983_s3 = inlined_call_operand.hbm [shape: f32[128,128], index: 3, kind: input, shape index: {}]   ;;  %s984_s4 = inlined_call_operand.hbm [shape: f32[128,128], index: 4, kind: input, shape index: {}]   ;;  %s985_s5 = inlined_call_operand.hbm [shape: f32[128,256], index: 5, kind: input, shape index: {}]   ;;  %s986_s6 = inlined_call_operand.hbm [shape: f32[128,256], index: 6, kind: input, shape index: {}]   ;;  %s987_s7 = inlined_call_operand.vmem [shape: f32[1,128], index: 7, kind: input, shape index: {}]   ;;  %s988_s8 = inlined_call_operand.vmem [shape: f32[1,256], index: 8, kind: input, shape index: {}]   ;;  %s989_s9 = inlined_call_operand.hbm [shape: f32[8,256], index: 9, kind: output, shape index: {}]  }
   0x1   :  { %15 = vsyncpa [#allocation7], 0 }
   0x2   :  { %16 = vsyncpa [#allocation10], 0 }
   0x3   :  { %17 = vsyncpa [#allocation13], 0 }
   0x4   :  { %18 = vsyncpa [#allocation5], 0  ;;  %s836_s30 = smov [#allocation6]   ;;  %s837_s11 = smov [#allocation9]  }
   0x5   :  { %s35_s10 = sshll.u32 %s836_s30, 4  ;;  %s54_s12 = sshll.u32 %s837_s11, 4  ;;  %s36_s10 = int_to_ptr.vmem [resolvable:$true] %s35_s10  ;;  %s55_s12 = int_to_ptr.vmem [resolvable:$true] %s54_s12 }
   0x6   :  { %s674_s13 = scalar_lea.vmem %s36_s10, 128  ;;  %p679_p1 = scmp.lt.s32.totalorder %s36_s10, %s36_s10 }
   0x7   :  { %p675_p0 = scmp.ne.s32.totalorder %s36_s10, %s674_s13  ;;  %p680_p2 = scmp.lt.s32.totalorder %s674_s13, %s674_s13 }
   0x9   :  { %p681_p3 = por %p680_p2, %p679_p1 }
   0xb   :  { %p682_p4 = pnand %p681_p3, %p675_p0 }
   0xd   :  { %685 = shalt.err (!%p682_p4)
}
   0xe   :  { %38 = dma.hbm_to_vmem [thread:$0]  %s981_s1, 128, %s36_s10, [#allocation7]  }
   0xf   :  { %s694_s16 = scalar_lea.vmem %s55_s12, 2048  ;;  %p699_p6 = scmp.lt.s32.totalorder %s55_s12, %s55_s12 }
  0x10   :  { %p695_p5 = scmp.ne.s32.totalorder %s55_s12, %s694_s16  ;;  %p700_p7 = scmp.lt.s32.totalorder %s694_s16, %s694_s16 }
  0x12   :  { %p701_p8 = por %p700_p7, %p699_p6 }
  0x14   :  { %p702_p9 = pnand %p701_p8, %p695_p5 }
  0x16   :  { %705 = shalt.err (!%p702_p9)
}
  0x17   :  { %s838_s17 = smov 128   ;;  %s839_s18 = smov 8  }
  0x18   :  { %60 = dma.hbm_to_vmem [thread:$0]  %s983_s3, 2048, %s55_s12, [#allocation10], %s838_s17, %s838_s17, %s839_s18  }
  0x19   :  { %s840_s21 = smov [#allocation12]  }
  0x1a   :  { %s78_s22 = sshll.u32 %s840_s21, 4  ;;  %s79_s22 = int_to_ptr.vmem [resolvable:$true] %s78_s22 }
  0x1b   :  { %s714_s1 = scalar_lea.vmem %s79_s22, 4096  ;;  %p719_p11 = scmp.lt.s32.totalorder %s79_s22, %s79_s22 }
  0x1c   :  { %p715_p10 = scmp.ne.s32.totalorder %s79_s22, %s714_s1  ;;  %p720_p12 = scmp.lt.s32.totalorder %s714_s1, %s714_s1 }
  0x1e   :  { %p721_p13 = por %p720_p12, %p719_p11 }
  0x20   :  { %p722_p0 = pnand %p721_p13, %p715_p10 }
  0x22   :  { %725 = shalt.err (!%p722_p0)
}
  0x23   :  { %s841_s23 = smov 256   ;;  %s842_s24 = smov 16  }
  0x24   :  { %84 = dma.hbm_to_vmem [thread:$0]  %s985_s5, 4096, %s79_s22, [#allocation13], %s841_s23, %s841_s23, %s842_s24  }
  0x25   :  { %s843_s3 = smov [#allocation3]   ;;  %s844_s28 = smov [#allocation8]  }
  0x26   :  { %s25_s27 = sshll.u32 %s843_s3, 4  ;;  %s45_s29 = sshll.u32 %s844_s28, 4  ;;  %s26_s27 = int_to_ptr.vmem [resolvable:$true] %s25_s27  ;;  %s46_s29 = int_to_ptr.vmem [resolvable:$true] %s45_s29 }
  0x27   :  { %s734_s30 = scalar_lea.vmem %s26_s27, 128  ;;  %p739_p2 = scmp.lt.s32.totalorder %s26_s27, %s26_s27 }
  0x28   :  { %p735_p1 = scmp.ne.s32.totalorder %s26_s27, %s734_s30  ;;  %p740_p3 = scmp.lt.s32.totalorder %s734_s30, %s734_s30 }
  0x2a   :  { %p741_p4 = por %p740_p3, %p739_p2 }
  0x2c   :  { %p742_p5 = pnand %p741_p4, %p735_p1 }
  0x2e   :  { %745 = shalt.err (!%p742_p5)
}
  0x2f   :  { %28 = dma.hbm_to_vmem [thread:$0]  %s980_s0, 128, %s26_s27, [#allocation4]  }
  0x30   :  { %s754_s12 = scalar_lea.vmem %s46_s29, 128  ;;  %p759_p7 = scmp.lt.s32.totalorder %s46_s29, %s46_s29 }
  0x31   :  { %p755_p6 = scmp.ne.s32.totalorder %s46_s29, %s754_s12  ;;  %p760_p8 = scmp.lt.s32.totalorder %s754_s12, %s754_s12 }
  0x33   :  { %p761_p9 = por %p760_p8, %p759_p7 }
  0x35   :  { %p762_p10 = pnand %p761_p9, %p755_p6 }
  0x37   :  { %765 = shalt.err (!%p762_p10)
}
  0x38   :  { %48 = dma.hbm_to_vmem [thread:$0]  %s982_s2, 128, %s46_s29, [#allocation7]  }
  0x39   :  { %s845_s14 = smov [#allocation11]   ;;  %s846_s16 = smov [#allocation14]  }
  0x3a   :  { %s66_s15 = sshll.u32 %s845_s14, 4  ;;  %s90_s19 = sshll.u32 %s846_s16, 4  ;;  %s67_s15 = int_to_ptr.vmem [resolvable:$true] %s66_s15  ;;  %s91_s19 = int_to_ptr.vmem [resolvable:$true] %s90_s19 }
  0x3b   :  { %s774_s20 = scalar_lea.vmem %s67_s15, 2048  ;;  %p779_p12 = scmp.lt.s32.totalorder %s67_s15, %s67_s15 }
  0x3c   :  { %p775_p11 = scmp.ne.s32.totalorder %s67_s15, %s774_s20  ;;  %p780_p13 = scmp.lt.s32.totalorder %s774_s20, %s774_s20 }
  0x3e   :  { %p781_p0 = por %p780_p13, %p779_p12 }
  0x40   :  { %p782_p1 = pnand %p781_p0, %p775_p11 }
  0x42   :  { %785 = shalt.err (!%p782_p1)
}
  0x43   :  { %72 = dma.hbm_to_vmem [thread:$0]  %s984_s4, 2048, %s67_s15, [#allocation10], %s838_s17, %s838_s17, %s839_s18  }
  0x44   :  { %s794_s2 = scalar_lea.vmem %s91_s19, 4096  ;;  %p799_p3 = scmp.lt.s32.totalorder %s91_s19, %s91_s19 }
  0x45   :  { %p795_p2 = scmp.ne.s32.totalorder %s91_s19, %s794_s2  ;;  %p800_p4 = scmp.lt.s32.totalorder %s794_s2, %s794_s2 }
  0x47   :  { %p801_p5 = por %p800_p4, %p799_p3 }
  0x49   :  { %p802_p6 = pnand %p801_p5, %p795_p2 }
  0x4b   :  { %805 = shalt.err (!%p802_p6)
}
  0x4c   :  { %96 = dma.hbm_to_vmem [thread:$0]  %s986_s6, 4096, %s91_s19, [#allocation13], %s841_s23, %s841_s23, %s842_s24  }
  0x4d   :  { %826 = dma.done.wait [#allocation4], 128  }
  0x4e   :  { %827 = vsyncadd [#allocation4], 4294967168 }
  0x4f   :  { %828 = dma.done.wait [#allocation7], 256  }
  0x50   :  { %829 = vsyncadd [#allocation7], 4294967040 }
  0x51   :  { %830 = dma.done.wait [#allocation10], 4096  }
  0x52   :  { %831 = vsyncadd [#allocation10], 4294963200 }
  0x53   :  { %832 = dma.done.wait [#allocation13], 8192  }
  0x54   :  { %833 = vsyncadd [#allocation13], 4294959104  ;;  %v847_v0 = vmov 0.0   ;;  %vm848_vm0 = vmmov 0   ;;  %v138_v1 = vld [vmem:[#allocation9 + $0x78] sm:$0xff]  ;;  %v137_v2 = vld [vmem:[#allocation9 + $0x70] sm:$0xff] }
  0x55   :  { %582 = vmatprep.subr.mxu0 %v847_v0  ;;  %614 = vmatprep.mubr.msk.f32.mxu0 %vm848_vm0, %v847_v0  ;;  %v136_v3 = vld [vmem:[#allocation9 + $0x68] sm:$0xff]  ;;  %v135_v4 = vld [vmem:[#allocation9 + $0x60] sm:$0xff]  ;;  %v134_v5 = vld [vmem:[#allocation9 + $0x58] sm:$0xff] }
  0x56   :  { %326 = vmatprep.mubr.f32.mxu1 %v847_v0  ;;  %583 = vmatpush3.msra.mxu0 %v138_v1  ;;  %v133_v6 = vld [vmem:[#allocation9 + $0x50] sm:$0xff]  ;;  %v132_v7 = vld [vmem:[#allocation9 + $0x48] sm:$0xff]  ;;  %v249_v8 = vld [vmem:[#allocation14 + $0xf8] sm:$0xff] }
  0x57   :  { %584 = vmatprep.subr.mxu0 %v847_v0  ;;  %v248_v9 = vld [vmem:[#allocation14 + $0xf0] sm:$0xff]  ;;  %v131_v10 = vld [vmem:[#allocation9 + $0x40] sm:$0xff]  ;;  %262 = vmatprep.subr.mxu1 %v249_v8  ;;  %v247_v11 = vld [vmem:[#allocation14 + $0xe8] sm:$0xff] }
  0x58   :  { %585 = vmatpush3.msra.mxu0 %v137_v2  ;;  %v246_v12 = vld [vmem:[#allocation14 + $0xe0] sm:$0xff]  ;;  %263 = vmatpush1.msra.mxu1 %v248_v9  ;;  %v245_v13 = vld [vmem:[#allocation14 + $0xd8] sm:$0xff]  ;;  %v244_v15 = vld [vmem:[#allocation14 + $0xd0] sm:$0xff] }
  0x59   :  { %586 = vmatprep.subr.mxu0 %v847_v0  ;;  %v130_v14 = vld [vmem:[#allocation9 + $0x38] sm:$0xff]  ;;  %264 = vmatprep.subr.mxu1 %v247_v11  ;;  %v243_v16 = vld [vmem:[#allocation14 + $0xc8] sm:$0xff]  ;;  %v129_v17 = vld [vmem:[#allocation9 + $0x30] sm:$0xff] }
  0x5a   :  { %587 = vmatpush3.msra.mxu0 %v136_v3  ;;  %265 = vmatpush1.msra.mxu1 %v246_v12  ;;  %v242_v18 = vld [vmem:[#allocation14 + $0xc0] sm:$0xff]  ;;  %v241_v19 = vld [vmem:[#allocation14 + $0xb8] sm:$0xff]  ;;  %v128_v20 = vld [vmem:[#allocation9 + $0x28] sm:$0xff] }
  0x5b   :  { %588 = vmatprep.subr.mxu0 %v847_v0  ;;  %266 = vmatprep.subr.mxu1 %v245_v13  ;;  %v240_v21 = vld [vmem:[#allocation14 + $0xb0] sm:$0xff]  ;;  %v239_v22 = vld [vmem:[#allocation14 + $0xa8] sm:$0xff]  ;;  %v127_v23 = vld [vmem:[#allocation9 + $0x20] sm:$0xff] }
  0x5c   :  { %589 = vmatpush3.msra.mxu0 %v135_v4  ;;  %267 = vmatpush1.msra.mxu1 %v244_v15  ;;  %v238_v24 = vld [vmem:[#allocation14 + $0xa0] sm:$0xff]  ;;  %v237_v25 = vld [vmem:[#allocation14 + $0x98] sm:$0xff]  ;;  %v236_v27 = vld [vmem:[#allocation14 + $0x90] sm:$0xff] }
  0x5d   :  { %590 = vmatprep.subr.mxu0 %v847_v0  ;;  %268 = vmatprep.subr.mxu1 %v243_v16  ;;  %v126_v26 = vld [vmem:[#allocation9 + $0x18] sm:$0xff]  ;;  %v235_v28 = vld [vmem:[#allocation14 + $0x88] sm:$0xff]  ;;  %v125_v29 = vld [vmem:[#allocation9 + $0x10] sm:$0xff] }
  0x5e   :  { %591 = vmatpush3.msra.mxu0 %v134_v5  ;;  %269 = vmatpush1.msra.mxu1 %v242_v18  ;;  %v234_v30 = vld [vmem:[#allocation14 + $0x80] sm:$0xff]  ;;  %v233_v31 = vld [vmem:[#allocation14 + $0x78] sm:$0xff]  ;;  %v124_v32 = vld [vmem:[#allocation9 + $0x8] sm:$0xff] }
  0x5f   :  { %592 = vmatprep.subr.mxu0 %v847_v0  ;;  %270 = vmatprep.subr.mxu1 %v241_v19  ;;  %v232_v33 = vld [vmem:[#allocation14 + $0x70] sm:$0xff]  ;;  %v231_v34 = vld [vmem:[#allocation14 + $0x68] sm:$0xff]  ;;  %v123_v35 = vld [vmem:[#allocation9] sm:$0xff] }
  0x60   :  { %593 = vmatpush3.msra.mxu0 %v133_v6  ;;  %271 = vmatpush1.msra.mxu1 %v240_v21  ;;  %v230_v36 = vld [vmem:[#allocation14 + $0x60] sm:$0xff]  ;;  %v122_v37 = vld [vmem:[#allocation3] sm:$0xff]  ;;  %v350_v38 = vld [vmem:[#allocation11 + $0x78] sm:$0xff] }
  0x61   :  { %594 = vmatprep.subr.mxu0 %v847_v0  ;;  %272 = vmatprep.subr.mxu1 %v239_v22  ;;  %v229_v39 = vld [vmem:[#allocation14 + $0x58] sm:$0xff]  ;;  %v349_v40 = vld [vmem:[#allocation11 + $0x70] sm:$0xff]  ;;  %v227_v42 = vld [vmem:[#allocation14 + $0x48] sm:$0xff] }
  0x62   :  { %595 = vmatpush3.msra.mxu0 %v132_v7  ;;  %273 = vmatpush1.msra.mxu1 %v238_v24  ;;  %v228_v41 = vld [vmem:[#allocation14 + $0x50] sm:$0xff]  ;;  %v348_v43 = vld [vmem:[#allocation11 + $0x68] sm:$0xff]  ;;  %v226_v44 = vld [vmem:[#allocation14 + $0x40] sm:$0xff] }
  0x63   :  { %596 = vmatprep.subr.mxu0 %v847_v0  ;;  %274 = vmatprep.subr.mxu1 %v237_v25  ;;  %v225_v45 = vld [vmem:[#allocation14 + $0x38] sm:$0xff]  ;;  %v347_v46 = vld [vmem:[#allocation11 + $0x60] sm:$0xff]  ;;  %v224_v47 = vld [vmem:[#allocation14 + $0x30] sm:$0xff] }
  0x64   :  { %597 = vmatpush3.msra.mxu0 %v131_v10  ;;  %275 = vmatpush1.msra.mxu1 %v236_v27  ;;  %v223_v48 = vld [vmem:[#allocation14 + $0x28] sm:$0xff]  ;;  %v346_v49 = vld [vmem:[#allocation11 + $0x58] sm:$0xff]  ;;  %v222_v50 = vld [vmem:[#allocation14 + $0x20] sm:$0xff] }
  0x65   :  { %598 = vmatprep.subr.mxu0 %v847_v0  ;;  %276 = vmatprep.subr.mxu1 %v235_v28  ;;  %v221_v51 = vld [vmem:[#allocation14 + $0x18] sm:$0xff]  ;;  %v345_v52 = vld [vmem:[#allocation11 + $0x50] sm:$0xff]  ;;  %v344_v54 = vld [vmem:[#allocation11 + $0x48] sm:$0xff] }
  0x66   :  { %599 = vmatpush3.msra.mxu0 %v130_v14  ;;  %277 = vmatpush1.msra.mxu1 %v234_v30  ;;  %v220_v53 = vld [vmem:[#allocation14 + $0x10] sm:$0xff]  ;;  %v343_v55 = vld [vmem:[#allocation11 + $0x40] sm:$0xff]  ;;  %v342_v56 = vld [vmem:[#allocation11 + $0x38] sm:$0xff] }
  0x67   :  { %600 = vmatprep.subr.mxu0 %v847_v0  ;;  %278 = vmatprep.subr.mxu1 %v233_v31  ;;  %v341_v57 = vld [vmem:[#allocation11 + $0x30] sm:$0xff]  ;;  %v340_v58 = vld [vmem:[#allocation11 + $0x28] sm:$0xff]  ;;  %v339_v59 = vld [vmem:[#allocation11 + $0x20] sm:$0xff] }
  0x68   :  { %601 = vmatpush3.msra.mxu0 %v129_v17  ;;  %279 = vmatpush1.msra.mxu1 %v232_v33  ;;  %v338_v60 = vld [vmem:[#allocation11 + $0x18] sm:$0xff]  ;;  %v337_v61 = vld [vmem:[#allocation11 + $0x10] sm:$0xff]  ;;  %v336_v62 = vld [vmem:[#allocation11 + $0x8] sm:$0xff] }
  0x69   :  { %602 = vmatprep.subr.mxu0 %v847_v0  ;;  %280 = vmatprep.subr.mxu1 %v231_v34  ;;  %v335_v63 = vld [vmem:[#allocation11] sm:$0xff]  ;;  %v333_v1 = vld [vmem:[#allocation8] sm:$0xff]  ;;  %v219_v2 = vld [vmem:[#allocation14 + $0x8] sm:$0xff] }
  0x6a   :  { %603 = vmatpush3.msra.mxu0 %v128_v20  ;;  %281 = vmatpush1.msra.mxu1 %v230_v36  ;;  %v218_v3 = vld [vmem:[#allocation14] sm:$0xff]  ;;  %v217_v4 = vld [vmem:[#allocation6] sm:$0xff]  ;;  %v453_v5 = vld [vmem:[#allocation12 + $0xf8] sm:$0xff] }
  0x6b   :  { %604 = vmatprep.subr.mxu0 %v847_v0  ;;  %282 = vmatprep.subr.mxu1 %v229_v39  ;;  %v452_v6 = vld [vmem:[#allocation12 + $0xf0] sm:$0xff]  ;;  %v451_v7 = vld [vmem:[#allocation12 + $0xe8] sm:$0xff]  ;;  %v450_v8 = vld [vmem:[#allocation12 + $0xe0] sm:$0xff] }
  0x6c   :  { %605 = vmatpush3.msra.mxu0 %v127_v23  ;;  %283 = vmatpush1.msra.mxu1 %v228_v41  ;;  %v449_v9 = vld [vmem:[#allocation12 + $0xd8] sm:$0xff]  ;;  %v448_v10 = vld [vmem:[#allocation12 + $0xd0] sm:$0xff]  ;;  %v447_v11 = vld [vmem:[#allocation12 + $0xc8] sm:$0xff] }
  0x6d   :  { %606 = vmatprep.subr.mxu0 %v847_v0  ;;  %284 = vmatprep.subr.mxu1 %v227_v42  ;;  %v446_v12 = vld [vmem:[#allocation12 + $0xc0] sm:$0xff]  ;;  %v445_v13 = vld [vmem:[#allocation12 + $0xb8] sm:$0xff]  ;;  %v444_v14 = vld [vmem:[#allocation12 + $0xb0] sm:$0xff] }
  0x6e   :  { %607 = vmatpush3.msra.mxu0 %v126_v26  ;;  %285 = vmatpush1.msra.mxu1 %v226_v44  ;;  %v443_v15 = vld [vmem:[#allocation12 + $0xa8] sm:$0xff]  ;;  %v442_v16 = vld [vmem:[#allocation12 + $0xa0] sm:$0xff]  ;;  %v441_v17 = vld [vmem:[#allocation12 + $0x98] sm:$0xff] }
  0x6f   :  { %608 = vmatprep.subr.mxu0 %v847_v0  ;;  %286 = vmatprep.subr.mxu1 %v225_v45  ;;  %v439_v18 = vld [vmem:[#allocation12 + $0x88] sm:$0xff]  ;;  %v438_v19 = vld [vmem:[#allocation12 + $0x80] sm:$0xff]  ;;  %v437_v20 = vld [vmem:[#allocation12 + $0x78] sm:$0xff] }
  0x70   :  { %609 = vmatpush3.msra.mxu0 %v125_v29  ;;  %287 = vmatpush1.msra.mxu1 %v224_v47  ;;  %v436_v21 = vld [vmem:[#allocation12 + $0x70] sm:$0xff]  ;;  %v435_v22 = vld [vmem:[#allocation12 + $0x68] sm:$0xff]  ;;  %v434_v23 = vld [vmem:[#allocation12 + $0x60] sm:$0xff] }
  0x71   :  { %610 = vmatprep.subr.mxu0 %v847_v0  ;;  %288 = vmatprep.subr.mxu1 %v223_v48  ;;  %v433_v24 = vld [vmem:[#allocation12 + $0x58] sm:$0xff]  ;;  %v432_v25 = vld [vmem:[#allocation12 + $0x50] sm:$0xff]  ;;  %v431_v26 = vld [vmem:[#allocation12 + $0x48] sm:$0xff] }
  0x72   :  { %611 = vmatpush3.msra.mxu0 %v124_v32  ;;  %289 = vmatpush1.msra.mxu1 %v222_v50  ;;  %v430_v27 = vld [vmem:[#allocation12 + $0x40] sm:$0xff]  ;;  %v429_v28 = vld [vmem:[#allocation12 + $0x38] sm:$0xff]  ;;  %v428_v29 = vld [vmem:[#allocation12 + $0x30] sm:$0xff] }
  0x73   :  { %612 = vmatprep.subr.mxu0 %v847_v0  ;;  %290 = vmatprep.subr.mxu1 %v221_v51  ;;  %v427_v30 = vld [vmem:[#allocation12 + $0x28] sm:$0xff]  ;;  %v426_v31 = vld [vmem:[#allocation12 + $0x20] sm:$0xff]  ;;  %v425_v32 = vld [vmem:[#allocation12 + $0x18] sm:$0xff] }
  0x74   :  { %613 = vmatpush3.msra.mxu0 %v123_v35  ;;  %291 = vmatpush1.msra.mxu1 %v220_v53  ;;  %v424_v33 = vld [vmem:[#allocation12 + $0x10] sm:$0xff]  ;;  %v423_v34 = vld [vmem:[#allocation12 + $0x8] sm:$0xff]  ;;  %v422_v35 = vld [vmem:[#allocation12] sm:$0xff] }
  0x75   :  { %615 = vmatmul.mubr.f32.vlgmr.msra.gmra.mxu0 %v122_v37  ;;  %617 = vmatprep.subr.mxu0 %v847_v0 }
  0x76   :  { %618 = vmatpush3.msra.mxu0 %v350_v38  ;;  %649 = vmatprep.mubr.msk.f32.mxu0 %vm848_vm0, %v847_v0  ;;  %v547_v38 = vld [vmem:[%s987_s7] ss:$0 sm:$0xff]  ;;  %s849_s7 = smov [#allocation15]  }
  0x77   :  { %619 = vmatprep.subr.mxu0 %v847_v0  ;;  %292 = vmatprep.subr.mxu1 %v219_v2  ;;  %s535_s23 = sshll.u32 %s849_s7, 4  ;;  %s536_s23 = int_to_ptr.vmem [resolvable:$true] %s535_s23 }
  0x78   :  { %620 = vmatpush3.msra.mxu0 %v349_v40  ;;  %293 = vmatpush1.msra.mxu1 %v218_v3  ;;  %s806_s24 = scalar_lea.vmem %s536_s23, 256  ;;  %p811_p8 = scmp.lt.s32.totalorder %s536_s23, %s536_s23 }
  0x79   :  { %621 = vmatprep.subr.mxu0 %v847_v0  ;;  %327 = vmatmul.mubr.f32.vlgmr.msra.gmra.mxu1 %v217_v4  ;;  %p807_p7 = scmp.ne.s32.totalorder %s536_s23, %s806_s24  ;;  %p812_p9 = scmp.lt.s32.totalorder %s806_s24, %s806_s24 }
  0x7a   :  { %622 = vmatpush3.msra.mxu0 %v348_v43  ;;  %454 = vmatprep.subr.mxu1 %v453_v5  ;;  %v252_v43 = vlaneseq }
  0x7b   :  { %623 = vmatprep.subr.mxu0 %v847_v0  ;;  %518 = vmatprep.mubr.f32.mxu1 %v847_v0  ;;  %p813_p10 = por %p812_p9, %p811_p8 }
  0x7c   :  { %624 = vmatpush3.msra.mxu0 %v347_v46  ;;  %455 = vmatpush1.msra.mxu1 %v452_v6  ;;  %v253_v44 = vshrl.u32 %v252_v43, 7  ;;  %v250_v46 = vld [vmem:[%s988_s8] sm:$0x3] }
  0x7d   :  { %625 = vmatprep.subr.mxu0 %v847_v0  ;;  %456 = vmatprep.subr.mxu1 %v451_v7  ;;  %p814_p11 = pnand %p813_p10, %p807_p7 }
  0x7e   :  { %626 = vmatpush3.msra.mxu0 %v346_v49  ;;  %457 = vmatpush1.msra.mxu1 %v450_v8  ;;  %v254_v45 = vsub.s32 0, %v253_v44  ;;  %v258_v47 = vsub.s32 1, %v253_v44 }
  0x7f   :  { %627 = vmatprep.subr.mxu0 %v847_v0  ;;  %458 = vmatprep.subr.mxu1 %v449_v9 }
  0x80   :  { %628 = vmatpush3.msra.mxu0 %v345_v52  ;;  %459 = vmatpush1.msra.mxu1 %v448_v10  ;;  %v255_v49 = vrot.slane %v250_v46, %v254_v45  ;;  %v259_v50 = vrot.slane %v250_v46, %v258_v47 }
  0x81   :  { %629 = vmatprep.subr.mxu0 %v847_v0  ;;  %460 = vmatprep.subr.mxu1 %v447_v11 }
  0x82   :  { %630 = vmatpush3.msra.mxu0 %v344_v54  ;;  %461 = vmatpush1.msra.mxu1 %v446_v12 }
  0x83   :  { %631 = vmatprep.subr.mxu0 %v847_v0  ;;  %462 = vmatprep.subr.mxu1 %v445_v13 }
  0x84   :  { %632 = vmatpush3.msra.mxu0 %v343_v55  ;;  %463 = vmatpush1.msra.mxu1 %v444_v14 }
  0x85   :  { %633 = vmatprep.subr.mxu0 %v847_v0  ;;  %464 = vmatprep.subr.mxu1 %v443_v15 }
  0x86   :  { %634 = vmatpush3.msra.mxu0 %v342_v56  ;;  %465 = vmatpush1.msra.mxu1 %v442_v16 }
  0x87   :  { %635 = vmatprep.subr.mxu0 %v847_v0  ;;  %466 = vmatprep.subr.mxu1 %v441_v17 }
  0x88   :  { %636 = vmatpush3.msra.mxu0 %v341_v57 }
  0x89   :  { %637 = vmatprep.subr.mxu0 %v847_v0 }
  0x8a   :  { %638 = vmatpush3.msra.mxu0 %v340_v58 }
  0x8b   :  { %639 = vmatprep.subr.mxu0 %v847_v0 }
  0x8c   :  { %640 = vmatpush3.msra.mxu0 %v339_v59 }
  0x8d   :  { %641 = vmatprep.subr.mxu0 %v847_v0 }
  0x8e   :  { %642 = vmatpush3.msra.mxu0 %v338_v60 }
  0x8f   :  { %643 = vmatprep.subr.mxu0 %v847_v0 }
  0x90   :  { %644 = vmatpush3.msra.mxu0 %v337_v61 }
  0x91   :  { %645 = vmatprep.subr.mxu0 %v847_v0 }
  0x92   :  { %646 = vmatpush3.msra.mxu0 %v336_v62 }
  0x93   :  { %647 = vmatprep.subr.mxu0 %v847_v0  ;;  %v440_v0 = vld [vmem:[#allocation12 + $0x90] sm:$0xff] }
  0x94   :  { %648 = vmatpush3.msra.mxu0 %v335_v63  ;;  %467 = vmatpush1.msra.mxu1 %v440_v0 }
  0x95   :  { %650 = vmatmul.mubr.f32.vlgmr.msra.gmra.mxu0 %v333_v1  ;;  %468 = vmatprep.subr.mxu1 %v439_v18 }
  0x96   :  { %469 = vmatpush1.msra.mxu1 %v438_v19 }
  0x97   :  { %470 = vmatprep.subr.mxu1 %v437_v20 }
  0x98   :  { %471 = vmatpush1.msra.mxu1 %v436_v21 }
  0x99   :  { %472 = vmatprep.subr.mxu1 %v435_v22 }
  0x9a   :  { %473 = vmatpush1.msra.mxu1 %v434_v23 }
  0x9b   :  { %474 = vmatprep.subr.mxu1 %v433_v24 }
  0x9c   :  { %475 = vmatpush1.msra.mxu1 %v432_v25 }
  0x9d   :  { %476 = vmatprep.subr.mxu1 %v431_v26 }
  0x9e   :  { %477 = vmatpush1.msra.mxu1 %v430_v27 }
  0x9f   :  { %478 = vmatprep.subr.mxu1 %v429_v28 }
  0xa0   :  { %479 = vmatpush1.msra.mxu1 %v428_v29 }
  0xa1   :  { %480 = vmatprep.subr.mxu1 %v427_v30 }
  0xa2   :  { %481 = vmatpush1.msra.mxu1 %v426_v31 }
  0xa3   :  { %482 = vmatprep.subr.mxu1 %v425_v32 }
  0xa4   :  { %483 = vmatpush1.msra.mxu1 %v424_v33 }
  0xa5   :  { %484 = vmatprep.subr.mxu1 %v423_v34 }
  0xa6   :  { %485 = vmatpush1.msra.mxu1 %v422_v35 }
 0x135   :  { %v212_v36 = vpop.f32.mrf.mxu0 }
 0x136   :  { %v213_v39 = vadd.f32 %v547_v38, %v212_v36 }
 0x137   :  { %v616_v37 = vpop.f32.mrf.mxu0 }
 0x139   :  { %v328_v48 = vpop.f32.mrf.mxu1 }
 0x13a   :  { %v329_v52 = vadd.f32 %v328_v48, %v255_v49 }
 0x13b   :  { %v330_v51 = vpop.f32.mrf.mxu1 }
 0x13c   :  { %v331_v54 = vadd.f32 %v330_v51, %v259_v50 }
 0x155   :  { %v417_v40 = vpop.f32.mrf.mxu0 }
 0x156   :  { %v421_v41 = vadd.f32 %v417_v40, %v213_v39 }
 0x157   :  { %v651_v42 = vpop.f32.mrf.mxu0 }
 0x158   :  { %519 = vmatmul.mubr.f32.vlgmr.msra.gmra.mxu1 %v421_v41 }
 0x218   :  { %v520_v53 = vpop.f32.mrf.mxu1 }
 0x219   :  { %v525_v55 = vadd.f32 %v520_v53, %v329_v52 }
 0x21a   :  { %v522_v56 = vpop.f32.mrf.mxu1 }
 0x21b   :  { %527 = vst [vmem:[#allocation15] sm:$0xff] %v525_v55  ;;  %v526_v57 = vadd.f32 %v522_v56, %v331_v54 }
 0x21d   :  { %528 = vst [vmem:[#allocation15 + $0x8] sm:$0xff] %v526_v57 }
 0x21e   :  { %817 = shalt.err (!%p814_p11)
}
 0x21f   :  { %538 = dma.vmem_to_hbm [thread:$0]  %s536_s23, 256, %s989_s9, [#allocation5]  }
 0x220   :  { %834 = dma.done.wait [#allocation5], 256  }
 0x221   :  { %835 = vsyncadd [#allocation5], 4294967040 }
 0x222   :  { %542 = vsyncpa [#allocation4], 1 }
 0x223   :  { %543 = vsyncpa [#allocation7], 1 }
 0x224   :  { %544 = vsyncpa [#allocation10], 1 }
 0x225   :  { %545 = vsyncpa [#allocation13], 1 }
 0x226   :  { %546 = vsyncpa [#allocation5], 1 }

</bundles_post_ra>
